<compile_context>
chip_gen: v7x
topology: tpu7x:2x2x1
jax: 0.10.0
libtpu: 0.0.40
codegen_flags: <defaults>
</compile_context>

<pallas_src>
import functools

import jax
import jax.numpy as jnp
from jax import lax
from jax.experimental import pallas as pl
from jax.experimental.pallas import tpu as pltpu


# 8 MiB per streamed z_neg buffer (x2 for double buffering) sits inside every
# generation's recommended band (v5e: 4-8 MiB, v6e: 8-16 MiB, v7x: 8-12 MiB) and,
# double-buffered, fits comfortably under a 32 MiB scoped-VMEM limit everywhere.
# TODO(synk): finer generation-aware tile sizing via pltpu.get_tpu_info().
_TARGET_TILE_BYTES = 8 * 1024 * 1024


def _round_up(x: int, m: int) -> int:
    return (x + m - 1) // m * m


def _sublane_packing(itemsize: int) -> int:
    # 8 sublanes of 32-bit words; sub-32-bit dtypes pack along sublanes.
    return max(8, 32 // max(int(itemsize), 1))  # 8 for f32, 16 for bf16, 32 for int8/fp8


def _choose_tile_n(n: int, d: int, itemsize: int) -> int:
    sub = _sublane_packing(itemsize)
    row_bytes = max(d * itemsize, 1)
    t = max(sub, (_TARGET_TILE_BYTES // row_bytes) // sub * sub)
    return min(t, _round_up(n, sub))


def _make_contrastive_kernel(cross: bool, temperature: float, tile_n: int,
                             n_valid: int, apply_mask: bool):
    inv_t = 1.0 / float(temperature)
    eps2 = (1e-8) ** 2  # torch.cosine_similarity eps, applied to squared norms

    def kernel(zij_ref, zneg_ref, out_ref, q_ref, pos_ref, m_ref, l_ref):
        k = pl.program_id(0)

        @pl.when(k == 0)
        def _init():
            zi = zij_ref[0:1, :].astype(jnp.float32)  # (1, d)
            zj = zij_ref[1:2, :].astype(jnp.float32)  # (1, d)
            if cross:
                q = zi * inv_t                                     # fold 1/T into the query
                pos_s = jnp.sum(q * zj, axis=1, keepdims=True)     # (1, 1)
            else:
                inv_ni = lax.rsqrt(jnp.maximum(jnp.sum(zi * zi, axis=1, keepdims=True), eps2))
                inv_nj = lax.rsqrt(jnp.maximum(jnp.sum(zj * zj, axis=1, keepdims=True), eps2))
                q = zi * (inv_ni * inv_t)                          # fold 1/T and 1/||z_i||
                pos_s = jnp.sum(q * zj, axis=1, keepdims=True) * inv_nj
            q_ref[...] = q
            pos_ref[...] = pos_s
            m_ref[...] = pos_s                 # running max starts at the positive logit
            l_ref[...] = jnp.ones_like(pos_s)  # exp(pos_s - m) == 1

        # --- per-tile negative similarities: MXU contraction -> lane-dense (1, tile_n) ---
        zn = zneg_ref[...]                     # (tile_n, d), native dtype (no cast pass)
        q = q_ref[...]                         # (1, d) f32, already carries 1/T (and 1/||z_i||)
        neg_s = jnp.einsum("ad,nd->an", q, zn, preferred_element_type=jnp.float32)  # (1, tile_n)
        if not cross:
            sq = zn * zn                                        # VPU square, native dtype
            ones_row = jnp.ones((1, zn.shape[1]), dtype=jnp.float32)
            norm2 = jnp.einsum("ad,nd->an", ones_row, sq,
                               preferred_element_type=jnp.float32)  # f32 accumulation
            neg_s = neg_s * lax.rsqrt(jnp.maximum(norm2, eps2))
        if apply_mask:
            # Ragged last block: OOB rows hold undefined data; mask them BEFORE max/exp.
            col = lax.broadcasted_iota(jnp.int32, (1, tile_n), 1) + k * tile_n
            neg_s = jnp.where(col < n_valid, neg_s, -jnp.inf)

        # --- online logsumexp update (lane-dense row -> (1, 1) state) ---
        m_prev = m_ref[...]                                               # (1, 1), finite
        m_new = jnp.maximum(m_prev, jnp.max(neg_s, axis=-1, keepdims=True))
        l_ref[...] = (l_ref[...] * jnp.exp(m_prev - m_new)
                      + jnp.sum(jnp.exp(neg_s - m_new), axis=-1, keepdims=True))
        m_ref[...] = m_new

        @pl.when(k == pl.num_programs(0) - 1)
        def _finalize():
            loss = m_ref[...] + jnp.log(l_ref[...]) - pos_ref[...]   # lse - pos_s
            out_ref[...] = loss.astype(out_ref.dtype)

    return kernel


# TODO(synk): for v7x, engage the second TensorCore by batching multiple (z_i, z_j, z_neg)
# problems on a leading "parallel" grid axis, or by splitting the n axis into two partial
# logsumexps combined in the wrapper; the nn.Module forward is single-pair, so this wrapper
# keeps that interface.
# TODO(synk): if production d < 128, pack g = 128 // d rows per lane-row in the wrapper to
# avoid 128/d lane over-padding (only matters if a compute slot, not HBM, binds).
@functools.partial(jax.jit, static_argnames=("cross", "temperature"))
def contrastive_loss(z_i, z_j, z_neg, cross: bool, temperature: float = 0.07):
    d = z_i.shape[0]
    n = z_neg.shape[0]

    # Merge z_i / z_j into one small resident (2, d) input (single auxiliary DMA).
    zij = jnp.stack([z_i, z_j], axis=0)

    tile_n = _choose_tile_n(n, d, jnp.dtype(z_neg.dtype).itemsize)
    num_tiles = pl.cdiv(n, tile_n)
    # No HBM-side padding copy: the ragged last block is masked in-kernel.
    apply_mask = (n % tile_n) != 0

    kernel = _make_contrastive_kernel(cross, temperature, tile_n, n, apply_mask)

    out = pl.pallas_call(
        kernel,
        out_shape=jax.ShapeDtypeStruct((1, 1), jnp.float32),
        grid_spec=pltpu.PrefetchScalarGridSpec(
            num_scalar_prefetch=0,
            grid=(num_tiles,),
            in_specs=[
                pl.BlockSpec((2, d), lambda k: (0, 0)),        # zij stays resident
                pl.BlockSpec((tile_n, d), lambda k: (k, 0)),   # z_neg streamed in ~8 MiB tiles
            ],
            out_specs=pl.BlockSpec((1, 1), lambda k: (0, 0)),
            scratch_shapes=[
                pltpu.VMEM((1, d), jnp.float32),  # scaled query
                pltpu.VMEM((1, 1), jnp.float32),  # pos_s
                pltpu.VMEM((1, 1), jnp.float32),  # running max m
                pltpu.VMEM((1, 1), jnp.float32),  # running sum l
            ],
        ),
        compiler_params=pltpu.CompilerParams(
            dimension_semantics=("arbitrary",),        # reduction axis with carried state
            vmem_limit_bytes=32 * 1024 * 1024,         # 2 x 8 MiB streamed buffers + scratch
        ),
    )(zij, z_neg)

    if cross:
        # F.cross_entropy returns a scalar (mean over the single example)
        return out[0, 0]
    # non-cross branch returns a (1, 1) tensor (matches -log(num/den))
    return out


def _reference(z_i, z_j, z_neg, cross, temperature=0.07):
    q = z_i[None, :].astype(jnp.float32)
    pk = z_j[None, :].astype(jnp.float32)
    nk = z_neg[None, :, :].astype(jnp.float32)
    if cross:
        pos = jnp.sum(q * pk, axis=1)
        neg = jnp.einsum("bd,bnd->bn", q, nk)
        logits = jnp.concatenate([pos[:, None], neg], axis=1) / temperature
        return -jax.nn.log_softmax(logits, axis=1)[0, 0]
    eps = 1e-8
    ni = jnp.maximum(jnp.linalg.norm(q, axis=1), eps)
    nj = jnp.maximum(jnp.linalg.norm(pk, axis=1), eps)
    nn_ = jnp.maximum(jnp.linalg.norm(nk, axis=2), eps)
    pos = (jnp.sum(q * pk, axis=1) / (ni * nj))[:, None]
    neg = jnp.einsum("bd,bnd->bn", q, nk) / (ni[:, None] * nn_)
    sims = jnp.concatenate([pos, neg], axis=1) / temperature
    e = jnp.exp(sims)
    return -jnp.log(e[:, 0:1] / jnp.sum(e, axis=1, keepdims=True))


if __name__ == "__main__":
    key = jax.random.PRNGKey(0)
    k1, k2, k3, k4 = jax.random.split(key, 4)
    d, n = 32, 8
    z_i = jax.random.normal(k1, (d,), dtype=jnp.float32)
    z_j = jax.random.normal(k2, (d,), dtype=jnp.float32)
    z_neg = jax.random.normal(k3, (n, d), dtype=jnp.float32)
    z_neg_ragged = jax.random.normal(k4, (13, d), dtype=jnp.float32)  # exercises ragged-tile mask

    loss_cross = contrastive_loss(z_i, z_j, z_neg, cross=True)
    loss_cos = contrastive_loss(z_i, z_j, z_neg, cross=False)
    loss_cross_r = contrastive_loss(z_i, z_j, z_neg_ragged, cross=True)
    loss_cos_r = contrastive_loss(z_i, z_j, z_neg_ragged, cross=False)
    jax.block_until_ready((loss_cross, loss_cos, loss_cross_r, loss_cos_r))

    ref_cross = _reference(z_i, z_j, z_neg, True)
    ref_cos = _reference(z_i, z_j, z_neg, False)
    ref_cross_r = _reference(z_i, z_j, z_neg_ragged, True)
    ref_cos_r = _reference(z_i, z_j, z_neg_ragged, False)

    assert jnp.allclose(loss_cross, ref_cross, rtol=1e-5, atol=1e-5), (loss_cross, ref_cross)
    assert jnp.allclose(loss_cos, ref_cos, rtol=1e-5, atol=1e-5), (loss_cos, ref_cos)
    assert jnp.allclose(loss_cross_r, ref_cross_r, rtol=1e-5, atol=1e-5), (loss_cross_r, ref_cross_r)
    assert jnp.allclose(loss_cos_r, ref_cos_r, rtol=1e-5, atol=1e-5), (loss_cos_r, ref_cos_r)

    print("KERNEL_OK")
</pallas_src>

<mosaic_0001>
module attributes {stable_mosaic.version = 11 : i64} {
  func.func @kernel(%arg0: i32, %arg1: memref<2x32xf32, #tpu.memory_space<vmem>>, %arg2: memref<8x32xf32, #tpu.memory_space<vmem>>, %arg3: memref<1x1xf32, #tpu.memory_space<vmem>>, %arg4: memref<1x32xf32, #tpu.memory_space<vmem>>, %arg5: memref<1x1xf32, #tpu.memory_space<vmem>>, %arg6: memref<1x1xf32, #tpu.memory_space<vmem>>, %arg7: memref<1x1xf32, #tpu.memory_space<vmem>>) attributes {dimension_semantics = [#tpu.dimension_semantics<arbitrary>], iteration_bounds = array<i64: 1>, scalar_prefetch = 0 : i64, scratch_operands = 4 : i64, tpu.core_type = #tpu.core_type<tc>, window_params = [{pipeline_mode = #tpu.pipeline_mode<synchronous>, transform_indices = @transform_0, window_bounds = array<i64: 2, 32>}, {transform_indices = @transform_1, window_bounds = array<i64: 8, 32>}, {pipeline_mode = #tpu.pipeline_mode<synchronous>, transform_indices = @transform_2, window_bounds = array<i64: 1, 1>}]} {
    %c0_i32 = arith.constant 0 : i32
    %0 = arith.cmpi eq, %arg0, %c0_i32 : i32
    %1 = arith.extui %0 : i1 to i32
    %c0_i32_0 = arith.constant 0 : i32
    %2 = arith.cmpi ne, %1, %c0_i32_0 : i32
    scf.if %2 {
      %c0_16 = arith.constant 0 : index
      %c0_17 = arith.constant 0 : index
      %25 = vector.load %arg1[%c0_16, %c0_17] : memref<2x32xf32, #tpu.memory_space<vmem>>, vector<1x32xf32>
      %c1 = arith.constant 1 : index
      %c0_18 = arith.constant 0 : index
      %26 = vector.load %arg1[%c1, %c0_18] : memref<2x32xf32, #tpu.memory_space<vmem>>, vector<1x32xf32>
      %cst_19 = arith.constant 14.2857141 : f32
      %27 = vector.broadcast %cst_19 : f32 to vector<1x32xf32>
      %28 = arith.mulf %25, %27 : vector<1x32xf32>
      %29 = arith.mulf %28, %26 : vector<1x32xf32>
      %cst_20 = arith.constant dense<0.000000e+00> : vector<1xf32>
      %30 = vector.multi_reduction <add>, %29, %cst_20 [1] : vector<1x32xf32> to vector<1xf32>
      %31 = vector.shape_cast %30 : vector<1xf32> to vector<1x1xf32>
      %c0_21 = arith.constant 0 : index
      %c0_22 = arith.constant 0 : index
      %32 = vector.load %arg4[%c0_21, %c0_22] : memref<1x32xf32, #tpu.memory_space<vmem>>, vector<1x32xf32>
      tpu.vector_store %arg4[%c0_21, %c0_22], %28 {strides = array<i32>} : memref<1x32xf32, #tpu.memory_space<vmem>>, vector<1x32xf32>,
      %c0_23 = arith.constant 0 : index
      %c0_24 = arith.constant 0 : index
      %33 = vector.load %arg5[%c0_23, %c0_24] : memref<1x1xf32, #tpu.memory_space<vmem>>, vector<1x1xf32>
      tpu.vector_store %arg5[%c0_23, %c0_24], %31 {strides = array<i32>} : memref<1x1xf32, #tpu.memory_space<vmem>>, vector<1x1xf32>,
      %c0_25 = arith.constant 0 : index
      %c0_26 = arith.constant 0 : index
      %34 = vector.load %arg6[%c0_25, %c0_26] : memref<1x1xf32, #tpu.memory_space<vmem>>, vector<1x1xf32>
      tpu.vector_store %arg6[%c0_25, %c0_26], %31 {strides = array<i32>} : memref<1x1xf32, #tpu.memory_space<vmem>>, vector<1x1xf32>,
      %cst_27 = arith.constant 1.000000e+00 : f32
      %35 = vector.broadcast %cst_27 : f32 to vector<1x1xf32>
      %c0_28 = arith.constant 0 : index
      %c0_29 = arith.constant 0 : index
      %36 = vector.load %arg7[%c0_28, %c0_29] : memref<1x1xf32, #tpu.memory_space<vmem>>, vector<1x1xf32>
      tpu.vector_store %arg7[%c0_28, %c0_29], %35 {strides = array<i32>} : memref<1x1xf32, #tpu.memory_space<vmem>>, vector<1x1xf32>,
    } else {
    }
    %c0 = arith.constant 0 : index
    %c0_1 = arith.constant 0 : index
    %3 = vector.load %arg2[%c0, %c0_1] : memref<8x32xf32, #tpu.memory_space<vmem>>, vector<8x32xf32>
    %c0_2 = arith.constant 0 : index
    %c0_3 = arith.constant 0 : index
    %4 = vector.load %arg4[%c0_2, %c0_3] : memref<1x32xf32, #tpu.memory_space<vmem>>, vector<1x32xf32>
    "tpu.trace_start"() <{level = 10 : i32, message = "ad,nd->an"}> : () -> ()
    %cst = arith.constant dense<0.000000e+00> : vector<1x8xf32>
    %5 = tpu.matmul %4, %3, %cst {dimension_numbers = #tpu.dot_dimension_numbers<[1], [1], [0], [0], [0, 0, 1, 0], [], []>} : vector<1x32xf32>, vector<8x32xf32>, vector<1x8xf32> -> vector<1x8xf32>
    "tpu.trace_stop"() : () -> ()
    %c0_4 = arith.constant 0 : index
    %c0_5 = arith.constant 0 : index
    %6 = vector.load %arg6[%c0_4, %c0_5] : memref<1x1xf32, #tpu.memory_space<vmem>>, vector<1x1xf32>
    %cst_6 = arith.constant dense<0xFF800000> : vector<1xf32>
    %7 = vector.multi_reduction <maximumf>, %5, %cst_6 [1] : vector<1x8xf32> to vector<1xf32>
    %8 = vector.shape_cast %7 : vector<1xf32> to vector<1x1xf32>
    %9 = arith.maximumf %6, %8 : vector<1x1xf32>
    %c0_7 = arith.constant 0 : index
    %c0_8 = arith.constant 0 : index
    %10 = vector.load %arg7[%c0_7, %c0_8] : memref<1x1xf32, #tpu.memory_space<vmem>>, vector<1x1xf32>
    %11 = arith.subf %6, %9 : vector<1x1xf32>
    %12 = math.exp %11 : vector<1x1xf32>
    %13 = arith.mulf %10, %12 : vector<1x1xf32>
    %14 = vector.broadcast %9 : vector<1x1xf32> to vector<1x8xf32>
    %15 = arith.subf %5, %14 : vector<1x8xf32>
    %16 = math.exp %15 : vector<1x8xf32>
    %cst_9 = arith.constant dense<0.000000e+00> : vector<1xf32>
    %17 = vector.multi_reduction <add>, %16, %cst_9 [1] : vector<1x8xf32> to vector<1xf32>
    %18 = vector.shape_cast %17 : vector<1xf32> to vector<1x1xf32>
    %19 = arith.addf %13, %18 : vector<1x1xf32>
    %c0_10 = arith.constant 0 : index
    %c0_11 = arith.constant 0 : index
    %20 = vector.load %arg7[%c0_10, %c0_11] : memref<1x1xf32, #tpu.memory_space<vmem>>, vector<1x1xf32>
    tpu.vector_store %arg7[%c0_10, %c0_11], %19 {strides = array<i32>} : memref<1x1xf32, #tpu.memory_space<vmem>>, vector<1x1xf32>,
    %c0_12 = arith.constant 0 : index
    %c0_13 = arith.constant 0 : index
    %21 = vector.load %arg6[%c0_12, %c0_13] : memref<1x1xf32, #tpu.memory_space<vmem>>, vector<1x1xf32>
    tpu.vector_store %arg6[%c0_12, %c0_13], %9 {strides = array<i32>} : memref<1x1xf32, #tpu.memory_space<vmem>>, vector<1x1xf32>,
    %c0_i32_14 = arith.constant 0 : i32
    %22 = arith.cmpi eq, %arg0, %c0_i32_14 : i32
    %23 = arith.extui %22 : i1 to i32
    %c0_i32_15 = arith.constant 0 : i32
    %24 = arith.cmpi ne, %23, %c0_i32_15 : i32
    scf.if %24 {
      %c0_16 = arith.constant 0 : index
      %c0_17 = arith.constant 0 : index
      %25 = vector.load %arg6[%c0_16, %c0_17] : memref<1x1xf32, #tpu.memory_space<vmem>>, vector<1x1xf32>
      %c0_18 = arith.constant 0 : index
      %c0_19 = arith.constant 0 : index
      %26 = vector.load %arg7[%c0_18, %c0_19] : memref<1x1xf32, #tpu.memory_space<vmem>>, vector<1x1xf32>
      %27 = math.log %26 : vector<1x1xf32>
      %28 = arith.addf %25, %27 : vector<1x1xf32>
      %c0_20 = arith.constant 0 : index
      %c0_21 = arith.constant 0 : index
      %29 = vector.load %arg5[%c0_20, %c0_21] : memref<1x1xf32, #tpu.memory_space<vmem>>, vector<1x1xf32>
      %30 = arith.subf %28, %29 : vector<1x1xf32>
      %c0_22 = arith.constant 0 : index
      %c0_23 = arith.constant 0 : index
      %31 = vector.load %arg3[%c0_22, %c0_23] : memref<1x1xf32, #tpu.memory_space<vmem>>, vector<1x1xf32>
      tpu.vector_store %arg3[%c0_22, %c0_23], %30 {strides = array<i32>} : memref<1x1xf32, #tpu.memory_space<vmem>>, vector<1x1xf32>,
    } else {
    }
    return
  }
  func.func @transform_0(%arg0: i32) -> (i32, i32) {
    %c0_i32 = arith.constant 0 : i32
    %c0_i32_0 = arith.constant 0 : i32
    %c0_i32_1 = arith.constant 0 : i32
    return %c0_i32, %c0_i32_0 : i32, i32
  }
  func.func @transform_1(%arg0: i32) -> (i32, i32) {
    %c0_i32 = arith.constant 0 : i32
    %c0_i32_0 = arith.constant 0 : i32
    return %arg0, %c0_i32 : i32, i32
  }
  func.func @transform_2(%arg0: i32) -> (i32, i32) {
    %c0_i32 = arith.constant 0 : i32
    %c0_i32_0 = arith.constant 0 : i32
    %c0_i32_1 = arith.constant 0 : i32
    return %c0_i32, %c0_i32_0 : i32, i32
  }
}

</mosaic_0001>

<bundles_post_ra>
// kernel: contrastive_loss.1
= control target key start
LH: loop header
LB: loop body
LE: loop exit
PB: predicated region body
PF: predicated region fallthrough
CT: control target
= control target key end

     0   :  { %vm31_vm0 = vcmask 261120   ;;  %v209_v2 = vmov 0.0   ;;  %vm210_vm1 = vmmov 0   ;;  %vm20_vm2 = vcmask 253952   ;;  %s260_s0 = inlined_call_operand.vmem [shape: f32[2,32], index: 0, kind: input, shape index: {}]   ;;  %s261_s1 = inlined_call_operand.vmem [shape: f32[8,32], index: 1, kind: input, shape index: {}]   ;;  %s262_s2 = inlined_call_operand.hbm [shape: f32[1,1], index: 2, kind: output, shape index: {}]  }
   0x1   :  { %v29_v0 = vld [vmem:[%s261_s1] sm:$0xff]  ;;  %167 = vmatprep.subr.mxu0 %v209_v2  ;;  %169 = vmatprep.mubr.msk.f32.mxu0 %vm210_vm1, %v209_v2 }
   0x2   :  { %v16_v1 = vld [vmem:[%s260_s0] sm:$0x1]  ;;  %v17_v4 = vld [vmem:[%s260_s0 + $0x1] sm:$0x1]  ;;  %168 = vmatpush3.xpose.msk.msra.mxu0 %vm31_vm0, %v29_v0 }
   0x3   :  { %v18_v3 = vmul.f32 14.285714, %v16_v1 }
   0x4   :  { %7 = vsyncpa [#allocation7], 0  ;;  %vm25_vm3 = vcmask 0   ;;  %vm109_vm4 = vcmask 57344   ;;  %v211_v12 = vmov 0   ;;  %v212_v13 = vmov 1.0  }
   0x5   :  { %24 = vst.msk [vmem:[#allocation2] sm:$0x1] %vm20_vm2, %v18_v3  ;;  %v19_v5 = vmul.f32 %v18_v3, %v17_v4  ;;  %177 = vset.pattern.permute.xlu1 %v211_v12  ;;  %178 = vset.pattern.permute.xlu0 %v211_v12  ;;  %v124_v18 = vlaneseq  ;;  %s213_s0 = smov [#allocation6]  }
   0x6   :  { %28 = vst.msk [vmem:[#allocation5] sm:$0x1] %vm25_vm3, %v212_v13  ;;  %s155_s1 = sshll.u32 %s213_s0, 4  ;;  %s156_s1 = int_to_ptr.vmem [resolvable:$true] %s155_s1 }
   0x7   :  { %v21_v6 = vsel %vm20_vm2, %v19_v5, 0.0  ;;  %v125_v19 = vshrl.u32 %v124_v18, 7  ;;  %s185_s15 = scalar_lea.vmem %s156_s1, 16  ;;  %s189_s16 = scalar_lea.vmem %s156_s1, 32 }
   0x8   :  { %22 = vadd.xlane.f32.xlu0 %v21_v6  ;;  %p186_p0 = scmp.ne.s32.totalorder %s156_s1, %s185_s15  ;;  %p190_p1 = scmp.lt.s32.totalorder %s156_s1, %s156_s1 }
   0x9   :  { %v126_v20 = vsub.s32 0, %v125_v19  ;;  %p191_p2 = scmp.lt.s32.totalorder %s189_s16, %s185_s15 }
   0xb   :  { %p192_p3 = por %p191_p2, %p190_p1 }
   0xc   :  { %v30_v7 = vld [vmem:[#allocation2] sm:$0x1] }
   0xd   :  { %170 = vmatmul.mubr.msk.f32.vlgmr.msra.gmra.mrb[0].mxu0 %vm31_vm0, %v30_v7  ;;  %v114_v29 = vld [vmem:[#allocation5] sm:$0x1]  ;;  %p193_p4 = pnand %p192_p3, %p186_p0 }
  0x95   :  { %v23_v8 = vpop.xlane.xlu0 %22 }
  0x96   :  { %26 = vst.msk [vmem:[#allocation3] sm:$0x1] %vm25_vm3, %v23_v8  ;;  %27 = vst.msk [vmem:[#allocation4] sm:$0x1] %vm25_vm3, %v23_v8 }
  0x9d   :  { %v108_v14 = vld [vmem:[#allocation4] sm:$0x1]  ;;  %v146_v38 = vld [vmem:[#allocation3] sm:$0x1] }
  0xe0   :  { %v104_v9 = vpop.f32.mrb[0].mxu0 }
  0xe1   :  { %v171_v10 = vpop.f32.mrb[1].mxu0  ;;  %v110_v11 = vsel %vm109_vm4, %v104_v9, -inf }
  0xe2   :  { %111 = vmax.xlane.f32.xlu0 %v110_v11 }
 0x16f   :  { %v112_v15 = vpop.xlane.xlu0 %111 }
 0x170   :  { %v113_v16 = vmax.f32 %v108_v14, %v112_v15 }
 0x172   :  { %v115_v17 = vsub.f32 %v108_v14, %v113_v16  ;;  %137 = vst.msk [vmem:[#allocation4] sm:$0x1] %vm25_vm3, %v113_v16  ;;  %121 = vperm.xlu1 %177, %v113_v16  }
 0x174   :  { %v116_v27 = vmul.f32 1.442695, %v115_v17 }
 0x179   :  { %v141_v36 = vld [vmem:[#allocation4] sm:$0x1] }
 0x1f1   :  { %v122_v21 = vpop.permute.xlu1 %121 }
 0x1f2   :  { %v127_v22 = vrot.slane %v122_v21, %v126_v20 }
 0x1f4   :  { %v128_v23 = vsub.f32 %v104_v9, %v127_v22 }
 0x1f6   :  { %v129_v24 = vmul.f32 1.442695, %v128_v23 }
 0x1f8   :  { %179 = vpow2.f32 %v129_v24 }
 0x1f9   :  { %181 = vpow2.f32 %v116_v27 }
 0x202   :  { %v180_v25 = vpop.eup %179 }
 0x203   :  { %v131_v26 = vsel %vm109_vm4, %v180_v25, 0.0  ;;  %v182_v28 = vpop.eup %181 }
 0x204   :  { %132 = vadd.xlane.f32.xlu1 %v131_v26  ;;  %v118_v30 = vmul.f32 %v182_v28, %v114_v29 }
 0x291   :  { %v133_v31 = vpop.xlane.xlu1 %132 }
 0x292   :  { %v134_v32 = vadd.f32 %v133_v31, %v118_v30 }
 0x294   :  { %136 = vst.msk [vmem:[#allocation5] sm:$0x1] %vm25_vm3, %v134_v32 }
 0x29b   :  { %v142_v33 = vld [vmem:[#allocation5] sm:$0x1] }
 0x29c   :  { %183 = vlog2.f32 %v142_v33 }
 0x2a6   :  { %v184_v34 = vpop.eup %183 }
 0x2a7   :  { %v144_v35 = vmul.f32 0.6931472, %v184_v34 }
 0x2a9   :  { %v145_v37 = vadd.f32 %v144_v35, %v141_v36 }
 0x2ab   :  { %v147_v39 = vsub.f32 %v145_v37, %v146_v38 }
 0x2ad   :  { %148 = vst.msk [vmem:[#allocation6] sm:$0x1] %vm25_vm3, %v147_v39 }
 0x2ae   :  { %196 = shalt.err (!%p193_p4)
}
 0x2af   :  { %s197_s19 = scalar_lea.hbm %s262_s2, 16 }
 0x2b0   :  { %p198_p5 = scmp.ne.s32.totalorder %s262_s2, %s197_s19  ;;  %p201_p6 = scmp.lt.u32.totalorder %s197_s19, %s262_s2 }
 0x2b2   :  { %p203_p7 = pnand %p201_p6, %p198_p5 }
 0x2b4   :  { %206 = shalt.err (!%p203_p7)
}
 0x2b5   :  { %158 = dma.vmem_to_hbm [thread:$0]  %s156_s1, 16, %s262_s2, [#allocation7]  }
 0x2b6   :  { %207 = dma.done.wait [#allocation7], 16  }
 0x2b7   :  { %208 = vsyncadd [#allocation7], 4294967280 }
 0x2b8   :  { %162 = vsyncpa [#allocation7], 1 }

</bundles_post_ra>
